<compile_context>
chip_gen: v6e
topology: v6e:2x2x1
jax: 0.10.0
libtpu: 0.0.40
codegen_flags: <defaults>
</compile_context>

<pallas_src>
import functools

import jax
import jax.numpy as jnp
from jax import lax
from jax.experimental import pallas as pl
from jax.experimental.pallas import tpu as pltpu

_LANE = 128


def _round_up(x, m):
    return (x + m - 1) // m * m


def _tpu_generation():
    """Best-effort TPU generation from device_kind; 0 if unknown."""
    kind = ""
    try:
        kind = (jax.devices()[0].device_kind or "").lower()
    except Exception:
        pass
    if "v7" in kind:
        return 7
    if "v6" in kind:
        return 6
    if "v5" in kind:
        return 5
    return 0


def _focal_loss_kernel(logits_ref, target_ref, out_ref, acc_ref, *,
                       gamma, n_rows, tile_n, tiles_per_partial, num_tiles,
                       compute_dtype):
    p_idx = pl.program_id(0)
    t_idx = pl.program_id(1)
    raw_tile = p_idx * tiles_per_partial + t_idx

    @pl.when(t_idx == 0)
    def _init():
        acc_ref[...] = jnp.zeros_like(acc_ref)

    x = logits_ref[...].astype(compute_dtype)          # (tile_n, c_pad); no-op cast if same dtype
    tgt = target_ref[...]                              # (tile_n, 1) int32
    tn, cp = x.shape

    # --- main per-element sweep: one max, one exp (single consumer -> fuses) ---
    mrow = jnp.max(x, axis=-1)                         # (tn,)
    e = jnp.exp(x - mrow[:, None])                     # only per-element exp
    se = jnp.sum(e.astype(jnp.float32), axis=-1)       # (tn,) f32

    # one-hot pick of the target logit straight from x (exact: single term)
    col = lax.broadcasted_iota(jnp.int32, (tn, cp), 1)
    onehot = col == tgt                                # (tn, cp) bool
    picked = jnp.sum(jnp.where(onehot, x, 0.0), axis=-1)

    # --- lane-dense per-row epilogue on (1, tile_n) -----------------------------
    se = se.reshape(1, tn)
    picked = picked.astype(jnp.float32).reshape(1, tn)
    m1 = mrow.astype(jnp.float32).reshape(1, tn)
    ce = m1 + jnp.log(se) - picked                     # cross entropy, reduction='none'

    p = jnp.exp(-ce)
    w = 1.0 - p
    g = float(gamma)
    if g == int(g) and g >= 0:
        gi = int(g)
        if gi == 0:
            mod = jnp.ones_like(w)
        else:
            mod = w
            for _ in range(gi - 1):                    # VPU multiply chain (no EUP pow)
                mod = mod * w
    else:
        mod = jnp.power(w, g)                          # non-integer gamma fallback

    # Row validity: mask tail rows of the last tile and fully-overshoot tiles.
    rowi = lax.broadcasted_iota(jnp.int32, (1, tn), 1) + raw_tile * tile_n
    valid = (rowi < n_rows) & (raw_tile < num_tiles)

    # Lane-dense VMEM accumulator: plain elementwise add each step, reduce once.
    acc_ref[...] += jnp.where(valid, mod * ce, 0.0)

    # --- one lane-dense store of this partial's sum at the end ------------------
    @pl.when(t_idx == pl.num_programs(1) - 1)
    def _finalize():
        total = jnp.sum(acc_ref[...])
        r = lax.broadcasted_iota(jnp.int32, (8, _LANE), 0)
        c = lax.broadcasted_iota(jnp.int32, (8, _LANE), 1)
        out_ref[...] = jnp.where((r == 0) & (c == 0), total, 0.0)


def focal_loss_pallas(logits, target, gamma=2.0, *, tile_n=None,
                      num_partials=None, compute_dtype=None):
    """logits: (N, C) float (any float dtype), target: (N,) int. Scalar f32 loss."""
    n, c = logits.shape
    c_pad = _round_up(c, _LANE)
    if c_pad != c:
        # -inf padding is invisible to logsumexp and never selected by one-hot.
        logits = jnp.pad(logits, ((0, 0), (0, c_pad - c)),
                         constant_values=float("-inf"))
    target2d = target.astype(jnp.int32).reshape(n, 1)

    gen = _tpu_generation()
    if compute_dtype is None:
        # v7x: VPU/EUP saturate before HBM -> bf16 element math for bf16 inputs.
        # v5e/v6e: HBM-bound (and v5e has no bf16 VPU/EUP) -> f32 compute.
        compute_dtype = (jnp.bfloat16
                         if gen >= 7 and logits.dtype == jnp.bfloat16
                         else jnp.float32)

    itemsize = jnp.dtype(logits.dtype).itemsize
    sublane = 8 * max(1, 4 // itemsize)                # f32: 8, bf16: 16

    # Generation-aware VMEM budgets (total across pipeline buffers + temps).
    if gen >= 7:                                       # 64 MiB physical VMEM
        total_budget, vmem_cap = 36 << 20, 48 << 20
    elif gen in (5, 6):                                # 128 MiB physical VMEM
        total_budget, vmem_cap = 88 << 20, 104 << 20
    else:                                              # unknown: conservative
        total_budget, vmem_cap = 36 << 20, 48 << 20

    # VMEM bytes per tile row: 2 pipelined logits buffers, 2 pipelined target
    # buffers ((tile_n,1) int32 lane-pads to (tile_n,128) in VMEM), plus a
    # conservative allowance for Mosaic-internal full-tile f32/int32 temporaries.
    per_row = 2 * c_pad * itemsize + 2 * _LANE * 4 + 5 * c_pad * 4 + 32

    if tile_n is None:
        cap = max(sublane, (total_budget // per_row) // sublane * sublane)
        tile_n = n if n <= cap else cap                # full-dim exception or multiple of sublane

    num_tiles = pl.cdiv(n, tile_n)
    if num_partials is None:
        # 2 partials only where there are 2 TensorCores (v7x); 1 elsewhere so
        # odd tile counts never pay a duplicate overshoot-block DMA.
        num_partials = 2 if (gen >= 7 and num_tiles >= 2) else 1
    num_partials = max(1, min(int(num_partials), num_tiles))
    tiles_per_partial = pl.cdiv(num_tiles, num_partials)
    overshoot = num_partials * tiles_per_partial > num_tiles

    if overshoot:
        def in_idx(p, t):
            # Clamp so the DMA stays in bounds; the kernel masks the duplicate tile.
            return (jnp.minimum(p * tiles_per_partial + t, num_tiles - 1), 0)
    else:
        def in_idx(p, t):
            return (p * tiles_per_partial + t, 0)

    kernel = functools.partial(
        _focal_loss_kernel, gamma=float(gamma), n_rows=n, tile_n=tile_n,
        tiles_per_partial=tiles_per_partial, num_tiles=num_tiles,
        compute_dtype=compute_dtype)

    vmem_limit = int(min(max(per_row * tile_n + (4 << 20), 16 << 20), vmem_cap))

    cost = pl.CostEstimate(
        flops=10 * n * c_pad,
        transcendentals=n * c_pad + 2 * n,
        bytes_accessed=n * c_pad * itemsize + n * 4
        + num_partials * 8 * _LANE * 4)

    # Make the partials axis actually core-shard on v7x.
    if num_partials > 1 and gen >= 7 and hasattr(pltpu, "CORE_PARALLEL"):
        dim_sems = (pltpu.CORE_PARALLEL, pltpu.ARBITRARY)
    elif num_partials > 1:
        dim_sems = ("parallel", "arbitrary")
    else:
        dim_sems = ("arbitrary", "arbitrary")

    partials = pl.pallas_call(
        kernel,
        out_shape=jax.ShapeDtypeStruct((num_partials * 8, _LANE), jnp.float32),
        grid_spec=pltpu.PrefetchScalarGridSpec(
            num_scalar_prefetch=0,
            grid=(num_partials, tiles_per_partial),
            in_specs=[
                pl.BlockSpec((tile_n, c_pad), in_idx),   # logits row tile (native dtype)
                pl.BlockSpec((tile_n, 1), in_idx),       # target row tile
            ],
            out_specs=pl.BlockSpec((8, _LANE), lambda p, t: (p, 0)),
            scratch_shapes=[pltpu.VMEM((1, tile_n), jnp.float32)],
        ),
        compiler_params=pltpu.CompilerParams(
            dimension_semantics=dim_sems,
            vmem_limit_bytes=vmem_limit),
        cost_estimate=cost,
    )(logits, target2d)

    return jnp.sum(partials) / jnp.float32(n)


def _focal_loss_ref(logits, target, gamma=2.0):
    # pure-JAX reference mirroring the PyTorch code (weight=None path)
    logits = logits.astype(jnp.float32)
    lse = jax.scipy.special.logsumexp(logits, axis=-1)
    picked = jnp.take_along_axis(logits, target[:, None].astype(jnp.int32),
                                 axis=-1)[:, 0]
    ce = lse - picked
    p = jnp.exp(-ce)
    return jnp.mean((1.0 - p) ** gamma * ce)


if __name__ == "__main__":
    key = jax.random.PRNGKey(0)
    k1, k2, k3, k4 = jax.random.split(key, 4)

    # Case 1: small f32 problem (single tile, single partial).
    N1, C1 = 8, 16
    logits1 = jax.random.normal(k1, (N1, C1), dtype=jnp.float32)
    target1 = jax.random.randint(k2, (N1,), 0, C1, dtype=jnp.int32)
    loss1 = jax.block_until_ready(focal_loss_pallas(logits1, target1, gamma=2.0))
    ref1 = _focal_loss_ref(logits1, target1, gamma=2.0)
    assert jnp.allclose(loss1, ref1, rtol=1e-4, atol=1e-5), (loss1, ref1)

    # Case 2: bf16 logits streamed natively, multi-tile grid with a tail tile.
    N2, C2 = 40, 16
    logits2 = jax.random.normal(k3, (N2, C2), dtype=jnp.bfloat16)
    target2 = jax.random.randint(k4, (N2,), 0, C2, dtype=jnp.int32)
    loss2 = jax.block_until_ready(
        focal_loss_pallas(logits2, target2, gamma=2.0, tile_n=16))
    ref2 = _focal_loss_ref(logits2, target2, gamma=2.0)
    assert jnp.allclose(loss2, ref2, rtol=1e-2, atol=1e-4), (loss2, ref2)

    # Case 3: force a 2-way partial split with an overshoot tile
    # (exercises the index-map clamp + tile masking + per-partial finalize).
    loss3 = jax.block_until_ready(
        focal_loss_pallas(logits2, target2, gamma=2.0, tile_n=16, num_partials=2))
    assert jnp.allclose(loss3, ref2, rtol=1e-2, atol=1e-4), (loss3, ref2)

    print("KERNEL_OK")
</pallas_src>

<mosaic_0001>
module attributes {stable_mosaic.version = 11 : i64} {
  func.func @_focal_loss_kernel(%arg0: i32, %arg1: i32, %arg2: memref<8x128xf32, #tpu.memory_space<vmem>>, %arg3: memref<8x1xi32, #tpu.memory_space<vmem>>, %arg4: memref<8x128xf32, #tpu.memory_space<vmem>>, %arg5: memref<1x8xf32, #tpu.memory_space<vmem>>) attributes {dimension_semantics = [#tpu.dimension_semantics<arbitrary>, #tpu.dimension_semantics<arbitrary>], iteration_bounds = array<i64: 1, 1>, scalar_prefetch = 0 : i64, scratch_operands = 1 : i64, tpu.core_type = #tpu.core_type<tc>, window_params = [{transform_indices = @transform_0, window_bounds = array<i64: 8, 128>}, {transform_indices = @transform_1, window_bounds = array<i64: 8, 1>}, {transform_indices = @transform_2, window_bounds = array<i64: 8, 128>}]} {
    %c1_i32 = arith.constant 1 : i32
    %0 = arith.muli %arg0, %c1_i32 : i32
    %1 = arith.addi %0, %arg1 : i32
    %c0_i32 = arith.constant 0 : i32
    %2 = arith.cmpi eq, %arg1, %c0_i32 : i32
    %3 = arith.extui %2 : i1 to i32
    %c0_i32_0 = arith.constant 0 : i32
    %4 = arith.cmpi ne, %3, %c0_i32_0 : i32
    scf.if %4 {
      %cst_18 = arith.constant 0.000000e+00 : f32
      %49 = vector.broadcast %cst_18 : f32 to vector<1x8xf32>
      %c0_19 = arith.constant 0 : index
      %c0_20 = arith.constant 0 : index
      %50 = vector.load %arg5[%c0_19, %c0_20] : memref<1x8xf32, #tpu.memory_space<vmem>>, vector<1x8xf32>
      tpu.vector_store %arg5[%c0_19, %c0_20], %49 {strides = array<i32>} : memref<1x8xf32, #tpu.memory_space<vmem>>, vector<1x8xf32>,
    } else {
    }
    %c0 = arith.constant 0 : index
    %c0_1 = arith.constant 0 : index
    %5 = vector.load %arg2[%c0, %c0_1] : memref<8x128xf32, #tpu.memory_space<vmem>>, vector<8x128xf32>
    %c0_2 = arith.constant 0 : index
    %c0_3 = arith.constant 0 : index
    %6 = vector.load %arg3[%c0_2, %c0_3] : memref<8x1xi32, #tpu.memory_space<vmem>>, vector<8x1xi32>
    %cst = arith.constant dense<0xFF800000> : vector<8xf32>
    %7 = vector.multi_reduction <maximumf>, %5, %cst [1] : vector<8x128xf32> to vector<8xf32>
    %8 = vector.shape_cast %7 : vector<8xf32> to vector<8x1xf32>
    %9 = vector.broadcast %8 : vector<8x1xf32> to vector<8x128xf32>
    %10 = arith.subf %5, %9 : vector<8x128xf32>
    %11 = math.exp %10 : vector<8x128xf32>
    %cst_4 = arith.constant dense<0.000000e+00> : vector<8xf32>
    %12 = vector.multi_reduction <add>, %11, %cst_4 [1] : vector<8x128xf32> to vector<8xf32>
    %13 = tpu.iota {dimensions = array<i32: 1>} : vector<8x128xi32>
    %14 = vector.broadcast %6 : vector<8x1xi32> to vector<8x128xi32>
    %15 = arith.cmpi eq, %13, %14 : vector<8x128xi32>
    %cst_5 = arith.constant 0.000000e+00 : f32
    %16 = vector.broadcast %cst_5 : f32 to vector<8x128xf32>
    %17 = arith.select %15, %5, %16 : vector<8x128xi1>, vector<8x128xf32>
    %cst_6 = arith.constant dense<0.000000e+00> : vector<8xf32>
    %18 = vector.multi_reduction <add>, %17, %cst_6 [1] : vector<8x128xf32> to vector<8xf32>
    %19 = vector.shape_cast %12 : vector<8xf32> to vector<1x8xf32>
    %20 = vector.shape_cast %18 : vector<8xf32> to vector<1x8xf32>
    %21 = vector.shape_cast %7 : vector<8xf32> to vector<1x8xf32>
    %22 = math.log %19 : vector<1x8xf32>
    %23 = arith.addf %21, %22 : vector<1x8xf32>
    %24 = arith.subf %23, %20 : vector<1x8xf32>
    %cst_7 = arith.constant 0.000000e+00 : f32
    %25 = vector.broadcast %cst_7 : f32 to vector<1x8xf32>
    %26 = arith.subf %25, %24 : vector<1x8xf32>
    %27 = math.exp %26 : vector<1x8xf32>
    %cst_8 = arith.constant 1.000000e+00 : f32
    %28 = vector.broadcast %cst_8 : f32 to vector<1x8xf32>
    %29 = arith.subf %28, %27 : vector<1x8xf32>
    %30 = arith.mulf %29, %29 : vector<1x8xf32>
    %31 = tpu.iota {dimensions = array<i32: 1>} : vector<1x8xi32>
    %c8_i32 = arith.constant 8 : i32
    %32 = arith.muli %1, %c8_i32 : i32
    %33 = vector.broadcast %32 : i32 to vector<1x8xi32>
    %34 = arith.addi %31, %33 : vector<1x8xi32>
    %c8_i32_9 = arith.constant 8 : i32
    %35 = vector.broadcast %c8_i32_9 : i32 to vector<1x8xi32>
    %36 = arith.cmpi slt, %34, %35 : vector<1x8xi32>
    %c1_i32_10 = arith.constant 1 : i32
    %37 = arith.cmpi slt, %1, %c1_i32_10 : i32
    %38 = vector.broadcast %37 : i1 to vector<1x8xi1>
    %39 = arith.andi %36, %38 : vector<1x8xi1>
    %c0_11 = arith.constant 0 : index
    %c0_12 = arith.constant 0 : index
    %40 = vector.load %arg5[%c0_11, %c0_12] : memref<1x8xf32, #tpu.memory_space<vmem>>, vector<1x8xf32>
    %41 = arith.mulf %30, %24 : vector<1x8xf32>
    %cst_13 = arith.constant 0.000000e+00 : f32
    %42 = vector.broadcast %cst_13 : f32 to vector<1x8xf32>
    %43 = arith.select %39, %41, %42 : vector<1x8xi1>, vector<1x8xf32>
    %44 = arith.addf %40, %43 : vector<1x8xf32>
    %c0_14 = arith.constant 0 : index
    %c0_15 = arith.constant 0 : index
    %45 = vector.load %arg5[%c0_14, %c0_15] : memref<1x8xf32, #tpu.memory_space<vmem>>, vector<1x8xf32>
    tpu.vector_store %arg5[%c0_14, %c0_15], %44 {strides = array<i32>} : memref<1x8xf32, #tpu.memory_space<vmem>>, vector<1x8xf32>,
    %c0_i32_16 = arith.constant 0 : i32
    %46 = arith.cmpi eq, %arg1, %c0_i32_16 : i32
    %47 = arith.extui %46 : i1 to i32
    %c0_i32_17 = arith.constant 0 : i32
    %48 = arith.cmpi ne, %47, %c0_i32_17 : i32
    scf.if %48 {
      %c0_18 = arith.constant 0 : index
      %c0_19 = arith.constant 0 : index
      %49 = vector.load %arg5[%c0_18, %c0_19] : memref<1x8xf32, #tpu.memory_space<vmem>>, vector<1x8xf32>
      %50 = vector.shape_cast %49 : vector<1x8xf32> to vector<1x1x8xf32>
      %cst_20 = arith.constant dense<0.000000e+00> : vector<1xf32>
      %51 = vector.multi_reduction <add>, %50, %cst_20 [1, 2] : vector<1x1x8xf32> to vector<1xf32>
      %52 = vector.shape_cast %51 : vector<1xf32> to vector<1x1x1xf32>
      %53 = vector.extract %52[0, 0, 0] : f32 from vector<1x1x1xf32>
      %54 = tpu.iota {dimensions = array<i32: 0>} : vector<8x128xi32>
      %55 = tpu.iota {dimensions = array<i32: 1>} : vector<8x128xi32>
      %c0_i32_21 = arith.constant 0 : i32
      %56 = vector.broadcast %c0_i32_21 : i32 to vector<8x128xi32>
      %57 = arith.cmpi eq, %54, %56 : vector<8x128xi32>
      %c0_i32_22 = arith.constant 0 : i32
      %58 = vector.broadcast %c0_i32_22 : i32 to vector<8x128xi32>
      %59 = arith.cmpi eq, %55, %58 : vector<8x128xi32>
      %60 = arith.andi %57, %59 : vector<8x128xi1>
      %cst_23 = arith.constant 0.000000e+00 : f32
      %61 = vector.broadcast %53 : f32 to vector<8x128xf32>
      %62 = vector.broadcast %cst_23 : f32 to vector<8x128xf32>
      %63 = arith.select %60, %61, %62 : vector<8x128xi1>, vector<8x128xf32>
      %c0_24 = arith.constant 0 : index
      %c0_25 = arith.constant 0 : index
      %64 = vector.load %arg4[%c0_24, %c0_25] : memref<8x128xf32, #tpu.memory_space<vmem>>, vector<8x128xf32>
      tpu.vector_store %arg4[%c0_24, %c0_25], %63 {strides = array<i32>} : memref<8x128xf32, #tpu.memory_space<vmem>>, vector<8x128xf32>,
    } else {
    }
    return
  }
  func.func @transform_0(%arg0: i32, %arg1: i32) -> (i32, i32) {
    %c1_i32 = arith.constant 1 : i32
    %0 = arith.muli %arg0, %c1_i32 : i32
    %1 = arith.addi %0, %arg1 : i32
    %c0_i32 = arith.constant 0 : i32
    %c0_i32_0 = arith.constant 0 : i32
    return %1, %c0_i32 : i32, i32
  }
  func.func @transform_1(%arg0: i32, %arg1: i32) -> (i32, i32) {
    %c1_i32 = arith.constant 1 : i32
    %0 = arith.muli %arg0, %c1_i32 : i32
    %1 = arith.addi %0, %arg1 : i32
    %c0_i32 = arith.constant 0 : i32
    %c0_i32_0 = arith.constant 0 : i32
    return %1, %c0_i32 : i32, i32
  }
  func.func @transform_2(%arg0: i32, %arg1: i32) -> (i32, i32) {
    %c0_i32 = arith.constant 0 : i32
    %c0_i32_0 = arith.constant 0 : i32
    return %arg0, %c0_i32 : i32, i32
  }
}

</mosaic_0001>

<bundles_post_ra>
// kernel: tpu_custom_call.1
= control target key start
LH: loop header
LB: loop body
LE: loop exit
PB: predicated region body
PF: predicated region fallthrough
CT: control target
= control target key end

     0   :  { %s213_s0 = inlined_call_operand.vmem [shape: f32[8,128], index: 0, kind: input, shape index: {}]   ;;  %s214_s1 = inlined_call_operand.vmem [shape: s32[8,1], index: 1, kind: input, shape index: {}]   ;;  %s215_s2 = inlined_call_operand.hbm [shape: f32[8,128], index: 2, kind: output, shape index: {}]  }
   0x1   :  { %v53_v0 = vld [vmem:[%s213_s0] sm:$0xff] }
   0x2   :  { %7 = vsyncpa [#allocation4], 0  ;;  %55 = vmax.xlane.f32.xlu0 %v53_v0  ;;  %v183_v1 = vmov 0   ;;  %v54_v2 = vld [vmem:[%s214_s1] sm:$0xff]  ;;  %v62_v6 = vlaneseq  ;;  %vm51_vm1 = vcmask 57344   ;;  %v184_v11 = vmov 0.0  }
   0x3   :  { %154 = vset.pattern.permute.xlu0 %v183_v1  ;;  %52 = vst.msk [vmem:[#allocation2] sm:$0x1] %vm51_vm1, %v184_v11  ;;  %s185_s0 = smov [#allocation3]  }
   0x4   :  { %v63_v7 = vand.u32 127, %v62_v6  ;;  %v93_v20 = vshrl.u32 %v62_v6, 7  ;;  %s129_s1 = sshll.u32 %s185_s0, 4  ;;  %s130_s1 = int_to_ptr.vmem [resolvable:$true] %s129_s1 }
   0x5   :  { %s161_s14 = scalar_lea.vmem %s130_s1, 128  ;;  %p166_p1 = scmp.lt.s32.totalorder %s130_s1, %s130_s1 }
   0x6   :  { %v94_v23 = vsub.s32 %v63_v7, %v93_v20  ;;  %vm83_vm2 = vcmp.lt.s32.totalorder %v63_v7, 8  ;;  %vm117_vm3 = vcmp.eq.s32.totalorder %v93_v20, 0  ;;  %vm118_vm4 = vcmp.eq.s32.totalorder %v63_v7, 0  ;;  %p162_p0 = scmp.ne.s32.totalorder %s130_s1, %s161_s14  ;;  %p167_p2 = scmp.lt.s32.totalorder %s161_s14, %s161_s14 }
   0x7   :  { %vm119_vm5 = vmand %vm117_vm3, %vm118_vm4 }
   0x8   :  { %p168_p3 = por %p167_p2, %p166_p1 }
   0xa   :  { %v89_v27 = vld [vmem:[#allocation2] sm:$0x1]  ;;  %p169_p4 = pnand %p168_p3, %p162_p0 }
  0x18   :  { %65 = vperm.xlu0 %154, %v54_v2  }
  0x8b   :  { %v56_v3 = vpop.xlane.xlu0 %55 }
  0x8c   :  { %v57_v4 = vsub.f32 %v53_v0, %v56_v3 }
  0x8e   :  { %v58_v5 = vmul.f32 1.442695, %v57_v4 }
  0x90   :  { %155 = vpow2.f32 %v58_v5 }
  0x93   :  { %v66_v8 = vpop.permute.xlu0 %65 }
  0x94   :  { %vm67_vm0 = vcmp.eq.s32.totalorder %v63_v7, %v66_v8 }
  0x95   :  { %v68_v10 = vsel %vm67_vm0, %v53_v0, 0.0 }
  0x9d   :  { %v156_v9 = vpop.eup %155 }
  0x9e   :  { %60 = vadd.xlane.f32.xlu1 %v156_v9 }
  0xa2   :  { %69 = vadd.xlane.f32.xlu1 %v68_v10 }
 0x127   :  { %v61_v12 = vpop.xlane.xlu1 %60 }
 0x128   :  { %157 = vlog2.f32 %v61_v12 }
 0x12b   :  { %v70_v15 = vpop.xlane.xlu1 %69 }
 0x135   :  { %v158_v13 = vpop.eup %157 }
 0x136   :  { %v72_v14 = vmul.f32 0.6931472, %v158_v13 }
 0x138   :  { %v73_v16 = vadd.f32 %v72_v14, %v56_v3 }
 0x13a   :  { %v74_v17 = vsub.f32 %v73_v16, %v70_v15 }
 0x13c   :  { %v75_v18 = vsub.f32 0.0, %v74_v17 }
 0x13e   :  { %v76_v19 = vmul.f32 1.442695, %v75_v18 }
 0x140   :  { %159 = vpow2.f32 %v76_v19 }
 0x14d   :  { %v160_v21 = vpop.eup %159 }
 0x14e   :  { %v78_v22 = vsub.f32 1.0, %v160_v21 }
 0x150   :  { %v79_v24 = vmul.f32 %v78_v22, %v78_v22 }
 0x152   :  { %v90_v25 = vmul.f32 %v79_v24, %v74_v17 }
 0x154   :  { %v95_v26 = vrot.slane %v90_v25, %v94_v23 }
 0x156   :  { %v97_v28 = vsel %vm83_vm2, %v95_v26, 0.0 }
 0x157   :  { %v98_v29 = vadd.f32 %v97_v28, %v89_v27 }
 0x159   :  { %100 = vst.msk [vmem:[#allocation2] sm:$0x1] %vm51_vm1, %v98_v29 }
 0x160   :  { %v104_v30 = vld [vmem:[#allocation2] sm:$0x1] }
 0x161   :  { %v105_v31 = vsel %vm51_vm1, %v104_v30, 0.0 }
 0x162   :  { %106 = vadd.xlane.f32.xlu1 %v105_v31 }
 0x1eb   :  { %v107_v32 = vpop.xlane.xlu1 %106 }
 0x1ec   :  { %v108_v33 = vrot.slane %v107_v32, 4 }
 0x1ee   :  { %v109_v34 = vadd.f32 %v108_v33, %v107_v32 }
 0x1f0   :  { %v110_v35 = vrot.slane %v109_v34, 2 }
 0x1f2   :  { %v111_v36 = vadd.f32 %v110_v35, %v109_v34 }
 0x1f4   :  { %v112_v37 = vrot.slane %v111_v36, 1 }
 0x1f6   :  { %v113_v38 = vadd.f32 %v112_v37, %v111_v36 }
 0x1f8   :  { %149 = vpush %v113_v38 }
 0x229   :  { %s150_s13 = spop %149 }
 0x22a   :  { %v120_v39 = vstv %s150_s13 }
 0x22b   :  { %v121_v40 = vsel %vm119_vm5, %v120_v39, 0.0 }
 0x22c   :  { %122 = vst [vmem:[#allocation3] sm:$0xff] %v121_v40 }
 0x22d   :  { %172 = shalt.err (!%p169_p4)
}
 0x22e   :  { %132 = dma.vmem_to_hbm [thread:$0]  %s130_s1, 128, %s215_s2, [#allocation4]  }
 0x22f   :  { %181 = dma.done.wait [#allocation4], 128  }
 0x230   :  { %182 = vsyncadd [#allocation4], 4294967168 }
 0x231   :  { %136 = vsyncpa [#allocation4], 1 }

</bundles_post_ra>
